<compile_context>
chip_gen: v6e
topology: v6e:2x2x1
jax: 0.10.0
libtpu: 0.0.40
codegen_flags: <defaults>
</compile_context>

<pallas_src>
import math
import numpy as np
import jax
import jax.numpy as jnp
from jax import lax
from jax.experimental import pallas as pl
from jax.experimental.pallas import tpu as pltpu

_EPS = 1e-5


def _round_up(x, m):
    return (x + m - 1) // m * m


def _pair(v):
    return (v, v) if isinstance(v, int) else tuple(v)


# ----------------------------------------------------------------------------
# Pallas kernels
# ----------------------------------------------------------------------------
def _matmul_scale_bias_kernel(a_ref, b_ref, s_ref, c_ref, o_ref):
    """out[i,j] += A[i,k] @ B[k,j]; scale/bias epilogue on the last k step."""
    k = pl.program_id(2)

    @pl.when(k == 0)
    def _():
        o_ref[...] = jnp.zeros_like(o_ref)

    o_ref[...] += jnp.dot(a_ref[...], b_ref[...],
                          preferred_element_type=jnp.float32)

    @pl.when(k == pl.num_programs(2) - 1)
    def _():
        o_ref[...] = o_ref[...] * s_ref[...] + c_ref[...]


def pallas_matmul_scale_bias(A, B, scale, bias):
    """out = (A @ B) * scale[None, :] + bias[None, :].

    3-D grid (Mt, Nt, Kt); bf16 operands, f32 accumulation in the resident
    output block; N (cout) padded to a multiple of 128 for lane-dense stores.
    """
    M, K = A.shape
    K2, N = B.shape
    assert K == K2

    Np = _round_up(N, 128)
    tn = min(256, Np)
    tm = min(256, _round_up(M, 8))
    Mp = _round_up(M, tm)
    tk = min(512, _round_up(K, 128))
    Kp = _round_up(K, tk)

    A = A.astype(jnp.bfloat16)
    B = B.astype(jnp.bfloat16)
    if Mp != M or Kp != K:
        A = jnp.pad(A, ((0, Mp - M), (0, Kp - K)))
    if Kp != K or Np != N:
        B = jnp.pad(B, ((0, Kp - K), (0, Np - N)))
    s = scale.reshape(1, N).astype(jnp.float32)
    c = bias.reshape(1, N).astype(jnp.float32)
    if Np != N:
        s = jnp.pad(s, ((0, 0), (0, Np - N)))
        c = jnp.pad(c, ((0, 0), (0, Np - N)))

    grid = (Mp // tm, Np // tn, Kp // tk)
    out = pl.pallas_call(
        _matmul_scale_bias_kernel,
        out_shape=jax.ShapeDtypeStruct((Mp, Np), jnp.float32),
        grid_spec=pltpu.PrefetchScalarGridSpec(
            num_scalar_prefetch=0,
            grid=grid,
            in_specs=[
                pl.BlockSpec((tm, tk), lambda i, j, k: (i, k)),
                pl.BlockSpec((tk, tn), lambda i, j, k: (k, j)),
                pl.BlockSpec((1, tn), lambda i, j, k: (0, j)),
                pl.BlockSpec((1, tn), lambda i, j, k: (0, j)),
            ],
            out_specs=pl.BlockSpec((tm, tn), lambda i, j, k: (i, j)),
        ),
        compiler_params=pltpu.CompilerParams(
            dimension_semantics=("parallel", "parallel", "arbitrary"),
            vmem_limit_bytes=32 * 1024 * 1024,
        ),
    )(A, B, s, c)
    if Mp != M or Np != N:
        out = out[:M, :N]
    return out


def _rev_att_kernel(c_ref, f_ref, o_ref):
    # c_ref: (tm, 1) mask logits, f_ref/o_ref: (tm, C) — broadcast in-kernel.
    o_ref[...] = (1.0 - jax.nn.sigmoid(c_ref[...])) * f_ref[...]


def reverse_attention(crop, feat):
    """PyTorch: (-1*sigmoid(crop)+1).expand(-1, C, -1, -1).mul(feat), NHWC layout.

    crop: (N, H, W, 1), feat: (N, H, W, C).  Lane axis is C (dense), rows tiled.
    """
    N, H, W, C = feat.shape
    M = N * H * W
    f2 = feat.reshape(M, C)
    c2 = crop.reshape(M, 1)
    tm = M if M <= 1024 else 512
    Mp = _round_up(M, tm)
    if Mp != M:
        f2 = jnp.pad(f2, ((0, Mp - M), (0, 0)))
        c2 = jnp.pad(c2, ((0, Mp - M), (0, 0)))
    out = pl.pallas_call(
        _rev_att_kernel,
        out_shape=jax.ShapeDtypeStruct((Mp, C), feat.dtype),
        grid_spec=pltpu.PrefetchScalarGridSpec(
            num_scalar_prefetch=0,
            grid=(Mp // tm,),
            in_specs=[
                pl.BlockSpec((tm, 1), lambda i: (i, 0)),
                pl.BlockSpec((tm, C), lambda i: (i, 0)),
            ],
            out_specs=pl.BlockSpec((tm, C), lambda i: (i, 0)),
        ),
        compiler_params=pltpu.CompilerParams(
            dimension_semantics=("parallel",),
        ),
    )(c2, f2)
    if Mp != M:
        out = out[:M]
    return out.reshape(N, H, W, C)


# ----------------------------------------------------------------------------
# Convolution glue (NHWC im2col in JAX, matmul in Pallas)
# ----------------------------------------------------------------------------
def im2col_nhwc(x, kh, kw, stride, padding, dilation):
    N, H, W, C = x.shape
    sh, sw = stride
    ph, pw = padding
    dh, dw = dilation
    Ho = (H + 2 * ph - dh * (kh - 1) - 1) // sh + 1
    Wo = (W + 2 * pw - dw * (kw - 1) - 1) // sw + 1
    if kh == 1 and kw == 1 and (sh, sw) == (1, 1) and (ph, pw) == (0, 0):
        return x.reshape(N * H * W, C), (N, Ho, Wo)
    xp = jnp.pad(x, ((0, 0), (ph, ph), (pw, pw), (0, 0)))
    cols = []
    for i in range(kh):
        for j in range(kw):
            patch = lax.slice(
                xp,
                (0, i * dh, j * dw, 0),
                (N, i * dh + sh * (Ho - 1) + 1, j * dw + sw * (Wo - 1) + 1, C),
                (1, sh, sw, 1))
            cols.append(patch)                       # (N, Ho, Wo, C)
    col = jnp.concatenate(cols, axis=-1)             # (N, Ho, Wo, kh*kw*C)
    A = col.reshape(N * Ho * Wo, kh * kw * C)
    return A, (N, Ho, Wo)


def conv2d(x, w, scale, bias, stride=1, padding=0, dilation=1):
    """x: NHWC, w: OIHW (torch layout).  Returns NHWC."""
    cout, cin, kh, kw = w.shape
    A, (N, Ho, Wo) = im2col_nhwc(x, kh, kw, _pair(stride), _pair(padding),
                                 _pair(dilation))
    Wm = w.transpose(2, 3, 1, 0).reshape(kh * kw * cin, cout)  # (kh,kw,cin)->cols
    out = pallas_matmul_scale_bias(A, Wm, scale, bias)
    return out.reshape(N, Ho, Wo, cout)


# ----------------------------------------------------------------------------
# Parameter constructors (deterministic, synthetic)
# ----------------------------------------------------------------------------
def make_basic_conv(key, cin, cout, ksize, stride=1, padding=0, dilation=1):
    kh, kw = _pair(ksize)
    k0, k1, k2, k3, k4 = jax.random.split(key, 5)
    fan_in = cin * kh * kw
    return dict(
        kind="basic",
        w=jax.random.normal(k0, (cout, cin, kh, kw), jnp.float32) / math.sqrt(fan_in),
        gamma=1.0 + 0.1 * jax.random.normal(k1, (cout,), jnp.float32),
        beta=0.1 * jax.random.normal(k2, (cout,), jnp.float32),
        mean=0.1 * jax.random.normal(k3, (cout,), jnp.float32),
        var=1.0 + 0.1 * jax.random.uniform(k4, (cout,), jnp.float32),
        stride=stride, padding=padding, dilation=dilation)


def make_conv(key, cin, cout, ksize=1, stride=1, padding=0):
    kh, kw = _pair(ksize)
    k0, k1 = jax.random.split(key)
    fan_in = cin * kh * kw
    return dict(
        kind="conv",
        w=jax.random.normal(k0, (cout, cin, kh, kw), jnp.float32) / math.sqrt(fan_in),
        b=0.1 * jax.random.normal(k1, (cout,), jnp.float32),
        stride=stride, padding=padding, dilation=1)


def apply_conv_module(p, x):
    if p["kind"] == "basic":
        # BasicConv2d.forward == Conv2d(bias=False) -> BatchNorm2d (eval), no ReLU
        scale = p["gamma"] / jnp.sqrt(p["var"] + _EPS)
        bias = p["beta"] - p["mean"] * scale
    else:
        cout = p["w"].shape[0]
        scale = jnp.ones((cout,), jnp.float32)
        bias = p["b"]
    return conv2d(x, p["w"], scale, bias, p["stride"], p["padding"], p["dilation"])


# ----------------------------------------------------------------------------
# Bilinear interpolation (PyTorch semantics) & maxpool — plain JAX glue (NHWC)
# ----------------------------------------------------------------------------
def _interp_matrix(in_size, out_size, align_corners):
    R = np.zeros((out_size, in_size), np.float32)
    for o in range(out_size):
        if align_corners:
            src = 0.0 if out_size == 1 else o * (in_size - 1) / (out_size - 1)
        else:
            src = max((o + 0.5) * (in_size / out_size) - 0.5, 0.0)
        i0 = min(int(np.floor(src)), in_size - 1)
        i1 = min(i0 + 1, in_size - 1)
        w1 = src - i0
        R[o, i0] += 1.0 - w1
        R[o, i1] += w1
    return jnp.asarray(R)


def bilinear_resize(x, out_h, out_w, align_corners=False):
    N, H, W, C = x.shape
    if out_h == H and out_w == W:
        return x
    Rh = _interp_matrix(H, out_h, align_corners)
    Rw = _interp_matrix(W, out_w, align_corners)
    y = jnp.einsum("oh,nhwc->nowc", Rh, x)
    y = jnp.einsum("pw,nowc->nopc", Rw, y)
    return y


def resize_sf(x, sf, align_corners=False):
    _, H, W, _ = x.shape
    return bilinear_resize(x, int(math.floor(H * sf)), int(math.floor(W * sf)),
                           align_corners)


def maxpool_3x3_s2(x):
    return lax.reduce_window(x, -jnp.inf, lax.max, (1, 3, 3, 1), (1, 2, 2, 1),
                             ((0, 0), (1, 1), (1, 1), (0, 0)))


# ----------------------------------------------------------------------------
# RFB_modified
# ----------------------------------------------------------------------------
def init_rfb(key, cin, cout):
    ks = iter(jax.random.split(key, 16))
    return dict(
        b0=[make_basic_conv(next(ks), cin, cout, 1)],
        b1=[make_basic_conv(next(ks), cin, cout, 1),
            make_basic_conv(next(ks), cout, cout, (1, 3), padding=(0, 1)),
            make_basic_conv(next(ks), cout, cout, (3, 1), padding=(1, 0)),
            make_basic_conv(next(ks), cout, cout, 3, padding=3, dilation=3)],
        b2=[make_basic_conv(next(ks), cin, cout, 1),
            make_basic_conv(next(ks), cout, cout, (1, 5), padding=(0, 2)),
            make_basic_conv(next(ks), cout, cout, (5, 1), padding=(2, 0)),
            make_basic_conv(next(ks), cout, cout, 3, padding=5, dilation=5)],
        b3=[make_basic_conv(next(ks), cin, cout, 1),
            make_basic_conv(next(ks), cout, cout, (1, 7), padding=(0, 3)),
            make_basic_conv(next(ks), cout, cout, (7, 1), padding=(3, 0)),
            make_basic_conv(next(ks), cout, cout, 3, padding=7, dilation=7)],
        conv_cat=make_basic_conv(next(ks), 4 * cout, cout, 3, padding=1),
        conv_res=make_basic_conv(next(ks), cin, cout, 1))


def rfb_forward(P, x):
    def seq(mods, t):
        for m in mods:
            t = apply_conv_module(m, t)
        return t
    x0 = seq(P["b0"], x)
    x1 = seq(P["b1"], x)
    x2 = seq(P["b2"], x)
    x3 = seq(P["b3"], x)
    x_cat = apply_conv_module(P["conv_cat"],
                              jnp.concatenate([x0, x1, x2, x3], axis=-1))
    return jnp.maximum(x_cat + apply_conv_module(P["conv_res"], x), 0.0)


# ----------------------------------------------------------------------------
# aggregation (Partial Decoder)
# ----------------------------------------------------------------------------
def init_agg(key, channel, n_class):
    ks = iter(jax.random.split(key, 12))
    return dict(
        cu1=make_basic_conv(next(ks), channel, channel, 3, padding=1),
        cu2=make_basic_conv(next(ks), channel, channel, 3, padding=1),
        cu3=make_basic_conv(next(ks), channel, channel, 3, padding=1),
        cu4=make_basic_conv(next(ks), channel, channel, 3, padding=1),
        cu5=make_basic_conv(next(ks), 2 * channel, 2 * channel, 3, padding=1),
        cc2=make_basic_conv(next(ks), 2 * channel, 2 * channel, 3, padding=1),
        cc3=make_basic_conv(next(ks), 3 * channel, 3 * channel, 3, padding=1),
        conv4=make_basic_conv(next(ks), 3 * channel, 3 * channel, 3, padding=1),
        conv5=make_conv(next(ks), 3 * channel, n_class, 1))


def agg_forward(P, x1, x2, x3):
    ac = apply_conv_module

    def up2(t):  # nn.Upsample(scale_factor=2, mode='bilinear', align_corners=True)
        return bilinear_resize(t, t.shape[1] * 2, t.shape[2] * 2, align_corners=True)

    x1_1 = x1
    x2_1 = ac(P["cu1"], up2(x1)) * x2
    x3_1 = ac(P["cu2"], up2(up2(x1))) * ac(P["cu3"], up2(x2)) * x3
    x2_2 = jnp.concatenate([x2_1, ac(P["cu4"], up2(x1_1))], axis=-1)
    x2_2 = ac(P["cc2"], x2_2)
    x3_2 = jnp.concatenate([x3_1, ac(P["cu5"], up2(x2_2))], axis=-1)
    x3_2 = ac(P["cc3"], x3_2)
    x = ac(P["conv4"], x3_2)
    x = ac(P["conv5"], x)
    return x


# ----------------------------------------------------------------------------
# Inf_Net
# ----------------------------------------------------------------------------
def init_inf_net(key, channel=32, n_class=1):
    ks = iter(jax.random.split(key, 64))
    P = {}
    # TODO(synk): res2net50_v1b_26w_4s is an external pretrained backbone; it is
    # replaced here by a minimal synthetic conv stack producing the same channel
    # counts and strides (64@/2, 256@/4, 512@/8, 1024@/16, 2048@/32).
    P["stem"] = make_basic_conv(next(ks), 3, 64, 7, stride=2, padding=3)
    P["layer1"] = make_basic_conv(next(ks), 64, 256, 1)
    P["layer2"] = make_basic_conv(next(ks), 256, 512, 1, stride=2)
    P["layer3"] = make_basic_conv(next(ks), 512, 1024, 1, stride=2)
    P["layer4"] = make_basic_conv(next(ks), 1024, 2048, 1, stride=2)

    P["conv1down"] = make_conv(next(ks), 64, 16)
    P["conv2down"] = make_conv(next(ks), 256, 16)
    P["conv3down"] = make_conv(next(ks), 512, 16)
    P["conv4down"] = make_conv(next(ks), 1024, 16)
    P["conv5down"] = make_conv(next(ks), 2048, 16)
    for i in range(1, 6):
        P[f"score_dsn{i}"] = make_conv(next(ks), 16, 1)
    P["score_final"] = make_conv(next(ks), 5, 1)
    P["edge_conv"] = make_basic_conv(next(ks), 5, 64, 1)
    P["rfb3"] = init_rfb(next(ks), 512, channel)
    P["rfb4"] = init_rfb(next(ks), 1024, channel)
    P["rfb5"] = init_rfb(next(ks), 2048, channel)
    P["agg"] = init_agg(next(ks), channel, n_class)
    P["ra_h1_conv1"] = make_basic_conv(next(ks), 2048, 512, 1)
    P["ra_h1_conv2"] = make_basic_conv(next(ks), 512 + 64, 256, 5, padding=2)
    P["ra_h1_conv3"] = make_basic_conv(next(ks), 256, n_class, 1)
    P["ra_h2_conv1"] = make_basic_conv(next(ks), 1024, 256, 1)
    P["ra_h2_conv2"] = make_basic_conv(next(ks), 256 + 64, 64, 3, padding=1)
    P["ra_h2_conv3"] = make_basic_conv(next(ks), 64, n_class, 3, padding=1)
    P["ra_m2_conv1"] = make_basic_conv(next(ks), 512, 256, 1)
    P["ra_m2_conv2"] = make_basic_conv(next(ks), 256 + 64, 64, 5, padding=2)
    P["ra_m2_conv3"] = make_basic_conv(next(ks), 64, n_class, 1)
    P["ra_l1_conv1"] = make_basic_conv(next(ks), 256, 64, 1)
    P["ra_l1_conv2"] = make_basic_conv(next(ks), 64 + 64, 64, 3, padding=1)
    P["ra_l1_conv3"] = make_basic_conv(next(ks), 64, n_class, 1)
    P["ra_l2_conv1"] = make_basic_conv(next(ks), 64, 32, 1)
    P["ra_l2_conv2"] = make_basic_conv(next(ks), 32 + 64, 32, 3, padding=1)
    P["ra_l2_conv3"] = make_basic_conv(next(ks), 32, n_class, 3, padding=1)
    return P


def inf_net_forward(P, x_nchw):
    relu = lambda t: jnp.maximum(t, 0.0)
    ac = apply_conv_module
    cat = lambda ts: jnp.concatenate(ts, axis=-1)
    to_nchw = lambda t: t.transpose(0, 3, 1, 2)

    x = x_nchw.transpose(0, 2, 3, 1)       # NCHW -> NHWC, once at entry

    # ---- backbone features (synthetic; see TODO in init_inf_net) ----
    x1 = relu(ac(P["stem"], x))            # (N, H/2,  W/2,    64)
    x2 = maxpool_3x3_s2(x1)                # (N, H/4,  W/4,    64)
    x2 = relu(ac(P["layer1"], x2))         # (N, H/4,  W/4,   256)
    x3 = relu(ac(P["layer2"], x2))         # (N, H/8,  W/8,   512)
    x4 = relu(ac(P["layer3"], x3))         # (N, H/16, W/16, 1024)
    x5 = relu(ac(P["layer4"], x4))         # (N, H/32, W/32, 2048)

    x3_rfb = rfb_forward(P["rfb3"], x3)
    x4_rfb = rfb_forward(P["rfb4"], x4)
    x5_rfb = rfb_forward(P["rfb5"], x5)

    c1 = ac(P["conv1down"], x1)
    c2 = ac(P["conv2down"], x2)
    c3 = ac(P["conv3down"], x3)
    c4 = ac(P["conv4down"], x4)
    c5 = ac(P["conv5down"], x5)
    s1 = resize_sf(ac(P["score_dsn1"], c1), 2)
    s2 = resize_sf(ac(P["score_dsn2"], c2), 4)
    s3 = resize_sf(ac(P["score_dsn3"], c3), 8)
    s4 = resize_sf(ac(P["score_dsn4"], c4), 16)
    s5 = resize_sf(ac(P["score_dsn5"], c5), 32)
    fusecat = cat([s1, s2, s3, s4, s5])
    fuse = ac(P["score_final"], fusecat)
    edge_guidance = ac(P["edge_conv"], fusecat)
    lateral_edge = fuse

    ra5_feat = agg_forward(P["agg"], x5_rfb, x4_rfb, x3_rfb)
    lateral_map_5 = resize_sf(ra5_feat, 8)
    crop_5 = resize_sf(ra5_feat, 0.25)

    t = reverse_attention(crop_5, x5)
    t = cat([ac(P["ra_h1_conv1"], t), resize_sf(edge_guidance, 1 / 32)])
    t = relu(ac(P["ra_h1_conv2"], t))
    ra4_feat = ac(P["ra_h1_conv3"], t)
    t = ra4_feat + crop_5
    lateral_map_4 = resize_sf(t, 32)
    crop_4 = resize_sf(t, 2)

    t = reverse_attention(crop_4, x4)
    t = cat([ac(P["ra_h2_conv1"], t), resize_sf(edge_guidance, 1 / 16)])
    t = relu(ac(P["ra_h2_conv2"], t))
    ra3_feat = ac(P["ra_h2_conv3"], t)
    t = ra3_feat + crop_4
    lateral_map_3 = resize_sf(t, 16)
    crop_3 = resize_sf(t, 2)

    t = reverse_attention(crop_3, x3)
    t = cat([ac(P["ra_m2_conv1"], t), resize_sf(edge_guidance, 1 / 8)])
    t = relu(ac(P["ra_m2_conv2"], t))
    ra2_feat = ac(P["ra_m2_conv3"], t)
    t = ra2_feat + crop_3
    lateral_map_2 = resize_sf(t, 8)
    lm_1 = resize_sf(t, 2)

    t = reverse_attention(lm_1, x2)
    t = cat([ac(P["ra_l1_conv1"], t), resize_sf(edge_guidance, 1 / 4)])
    t = relu(ac(P["ra_l1_conv2"], t))
    low_map_2 = ac(P["ra_l1_conv3"], t)
    x_2 = low_map_2 + lm_1
    lateral_map_1 = resize_sf(x_2, 4)
    lm_2 = resize_sf(x_2, 2)

    t = reverse_attention(lm_2, x1)
    t = cat([ac(P["ra_l2_conv1"], t), resize_sf(edge_guidance, 1 / 2)])
    t = relu(ac(P["ra_l2_conv2"], t))
    low_map_1 = ac(P["ra_l2_conv3"], t)
    x_1 = low_map_1 + lm_2
    lateral_map_0 = resize_sf(x_1, 2)

    final_map = (lateral_map_4 + lateral_map_3 + lateral_map_2
                 + lateral_map_1 + lateral_map_0)
    outs = (lateral_map_5, lateral_map_4, lateral_map_3, lateral_map_2,
            lateral_map_1, lateral_map_0, final_map, lateral_edge)
    return tuple(to_nchw(o) for o in outs)   # back to PyTorch NCHW convention


if __name__ == "__main__":
    key = jax.random.PRNGKey(0)
    pkey, xkey = jax.random.split(key)
    params = init_inf_net(pkey, channel=32, n_class=1)
    # Small input consistent with the module: spatial must be divisible by 32.
    x = jax.random.normal(xkey, (1, 3, 64, 64), jnp.float32)
    outs = inf_net_forward(params, x)
    outs = jax.block_until_ready(outs)
    assert all(o.shape[:2] == (1, 1) and o.shape[2:] == (64, 64) for o in outs)
    assert all(bool(jnp.isfinite(o).all()) for o in outs)
    print("KERNEL_OK")
</pallas_src>

<mosaic_0001>
module attributes {stable_mosaic.version = 11 : i64} {
  func.func @_matmul_scale_bias_kernel(%arg0: i32, %arg1: i32, %arg2: i32, %arg3: memref<256x256xbf16, #tpu.memory_space<vmem>>, %arg4: memref<256x128xbf16, #tpu.memory_space<vmem>>, %arg5: memref<1x128xf32, #tpu.memory_space<vmem>>, %arg6: memref<1x128xf32, #tpu.memory_space<vmem>>, %arg7: memref<256x128xf32, #tpu.memory_space<vmem>>) attributes {dimension_semantics = [#tpu.dimension_semantics<parallel>, #tpu.dimension_semantics<parallel>, #tpu.dimension_semantics<arbitrary>], iteration_bounds = array<i64: 4, 1, 1>, scalar_prefetch = 0 : i64, scratch_operands = 0 : i64, tpu.core_type = #tpu.core_type<tc>, window_params = [{transform_indices = @transform_0, window_bounds = array<i64: 256, 256>}, {transform_indices = @transform_1, window_bounds = array<i64: 256, 128>}, {transform_indices = @transform_2, window_bounds = array<i64: 1, 128>}, {transform_indices = @transform_3, window_bounds = array<i64: 1, 128>}, {transform_indices = @transform_4, window_bounds = array<i64: 256, 128>}]} {
    %c0_i32 = arith.constant 0 : i32
    %0 = arith.cmpi eq, %arg2, %c0_i32 : i32
    %1 = arith.extui %0 : i1 to i32
    %c0_i32_0 = arith.constant 0 : i32
    %2 = arith.cmpi ne, %1, %c0_i32_0 : i32
    scf.if %2 {
      %cst_10 = arith.constant 0.000000e+00 : f32
      %12 = vector.broadcast %cst_10 : f32 to vector<256x128xf32>
      %c0_11 = arith.constant 0 : index
      %c0_12 = arith.constant 0 : index
      %13 = vector.load %arg7[%c0_11, %c0_12] : memref<256x128xf32, #tpu.memory_space<vmem>>, vector<256x128xf32>
      tpu.vector_store %arg7[%c0_11, %c0_12], %12 {strides = array<i32>} : memref<256x128xf32, #tpu.memory_space<vmem>>, vector<256x128xf32>,
    } else {
    }
    %c0 = arith.constant 0 : index
    %c0_1 = arith.constant 0 : index
    %3 = vector.load %arg7[%c0, %c0_1] : memref<256x128xf32, #tpu.memory_space<vmem>>, vector<256x128xf32>
    %c0_2 = arith.constant 0 : index
    %c0_3 = arith.constant 0 : index
    %4 = vector.load %arg3[%c0_2, %c0_3] : memref<256x256xbf16, #tpu.memory_space<vmem>>, vector<256x256xbf16>
    %c0_4 = arith.constant 0 : index
    %c0_5 = arith.constant 0 : index
    %5 = vector.load %arg4[%c0_4, %c0_5] : memref<256x128xbf16, #tpu.memory_space<vmem>>, vector<256x128xbf16>
    %cst = arith.constant dense<0.000000e+00> : vector<256x128xf32>
    %6 = tpu.matmul %4, %5, %cst {dimension_numbers = #tpu.dot_dimension_numbers<[1], [0], [0], [1], [0, 0, 1, 1], [], []>} : vector<256x256xbf16>, vector<256x128xbf16>, vector<256x128xf32> -> vector<256x128xf32>
    %7 = arith.addf %3, %6 : vector<256x128xf32>
    %c0_6 = arith.constant 0 : index
    %c0_7 = arith.constant 0 : index
    %8 = vector.load %arg7[%c0_6, %c0_7] : memref<256x128xf32, #tpu.memory_space<vmem>>, vector<256x128xf32>
    tpu.vector_store %arg7[%c0_6, %c0_7], %7 {strides = array<i32>} : memref<256x128xf32, #tpu.memory_space<vmem>>, vector<256x128xf32>,
    %c0_i32_8 = arith.constant 0 : i32
    %9 = arith.cmpi eq, %arg2, %c0_i32_8 : i32
    %10 = arith.extui %9 : i1 to i32
    %c0_i32_9 = arith.constant 0 : i32
    %11 = arith.cmpi ne, %10, %c0_i32_9 : i32
    scf.if %11 {
      %c0_10 = arith.constant 0 : index
      %c0_11 = arith.constant 0 : index
      %12 = vector.load %arg7[%c0_10, %c0_11] : memref<256x128xf32, #tpu.memory_space<vmem>>, vector<256x128xf32>
      %c0_12 = arith.constant 0 : index
      %c0_13 = arith.constant 0 : index
      %13 = vector.load %arg5[%c0_12, %c0_13] : memref<1x128xf32, #tpu.memory_space<vmem>>, vector<1x128xf32>
      %14 = vector.broadcast %13 : vector<1x128xf32> to vector<256x128xf32>
      %15 = arith.mulf %12, %14 : vector<256x128xf32>
      %c0_14 = arith.constant 0 : index
      %c0_15 = arith.constant 0 : index
      %16 = vector.load %arg6[%c0_14, %c0_15] : memref<1x128xf32, #tpu.memory_space<vmem>>, vector<1x128xf32>
      %17 = vector.broadcast %16 : vector<1x128xf32> to vector<256x128xf32>
      %18 = arith.addf %15, %17 : vector<256x128xf32>
      %c0_16 = arith.constant 0 : index
      %c0_17 = arith.constant 0 : index
      %19 = vector.load %arg7[%c0_16, %c0_17] : memref<256x128xf32, #tpu.memory_space<vmem>>, vector<256x128xf32>
      tpu.vector_store %arg7[%c0_16, %c0_17], %18 {strides = array<i32>} : memref<256x128xf32, #tpu.memory_space<vmem>>, vector<256x128xf32>,
    } else {
    }
    return
  }
  func.func @transform_0(%arg0: i32, %arg1: i32, %arg2: i32) -> (i32, i32) {
    %c0_i32 = arith.constant 0 : i32
    return %arg0, %arg2 : i32, i32
  }
  func.func @transform_1(%arg0: i32, %arg1: i32, %arg2: i32) -> (i32, i32) {
    %c0_i32 = arith.constant 0 : i32
    return %arg2, %arg1 : i32, i32
  }
  func.func @transform_2(%arg0: i32, %arg1: i32, %arg2: i32) -> (i32, i32) {
    %c0_i32 = arith.constant 0 : i32
    %c0_i32_0 = arith.constant 0 : i32
    return %c0_i32, %arg1 : i32, i32
  }
  func.func @transform_3(%arg0: i32, %arg1: i32, %arg2: i32) -> (i32, i32) {
    %c0_i32 = arith.constant 0 : i32
    %c0_i32_0 = arith.constant 0 : i32
    return %c0_i32, %arg1 : i32, i32
  }
  func.func @transform_4(%arg0: i32, %arg1: i32, %arg2: i32) -> (i32, i32) {
    %c0_i32 = arith.constant 0 : i32
    return %arg0, %arg1 : i32, i32
  }
}

</mosaic_0001>

<bundles_post_ra>
// kernel: tpu_custom_call.1
= control target key start
LH: loop header
LB: loop body
LE: loop exit
PB: predicated region body
PF: predicated region fallthrough
CT: control target
= control target key end

     0   :  { %s2046_s0 = inlined_call_operand.hbm [shape: bf16[1024,256], index: 0, kind: input, shape index: {}]   ;;  %s2047_s1 = inlined_call_operand.hbm [shape: bf16[256,128], index: 1, kind: input, shape index: {}]   ;;  %s2048_s2 = inlined_call_operand.vmem [shape: f32[1,128], index: 2, kind: input, shape index: {}]   ;;  %s2049_s3 = inlined_call_operand.vmem [shape: f32[1,128], index: 3, kind: input, shape index: {}]   ;;  %s2050_s4 = inlined_call_operand.hbm [shape: f32[1024,128], index: 4, kind: output, shape index: {}]  }
   0x1   :  { %2052 = sst [smem:[#allocation11_spill]] %s2047_s1 }
   0x2   :  { %9 = vsyncpa [#allocation3], 0 }
   0x3   :  { %11 = vsyncpa [#allocation3 + $0x1], 0 }
   0x4   :  { %12 = vsyncpa [#allocation6], 0 }
   0x5   :  { %13 = vsyncpa [#allocation4], 0 }
   0x6   :  { %15 = vsyncpa [#allocation4 + $0x1], 0  ;;  %s1720_s15 = smov 0   ;;  %s1722_s16 = smov 0  }
   0x7   :  { %s1724_s17 = smov 0   ;;  %s1726_s18 = smov 0  }
   0x8   :  { %s1728_s19 = smov 0   ;;  %s1730_s20 = smov 0  }
   0x9 LB: > { %s1201_s21 = sadd.s32 4294967295, %s1684_s20   ;;  %s1202_s22 = sadd.s32 4294967294, %s1684_s20   ;;  %s1684_s20 = sphi %s1730_s20, %s21_s20   ;;  %s1680_s19 = sphi %s1728_s19, %s2069_s19   ;;  %s1676_s18 = sphi %s1726_s18, %s2068_s18   ;;  %s1672_s17 = sphi %s1724_s17, %s2067_s17   ;;  %s1668_s16 = sphi %s1722_s16, %s2066_s16   ;;  %s1664_s15 = sphi %s1720_s15, %s2065_s15  }
   0xa   : > { %p62_p0 = scmp.ne.s32.totalorder %s1668_s16, %s1664_s15  ;;  %p1754_p1 = scmp.eq.s32.totalorder %s1201_s21, 0 }
   0xb   : > { %p1758_p2 = scmp.eq.s32.totalorder %s1201_s21, 3  ;;  %p174_p3 = scmp.eq.s32.totalorder %s1202_s22, 3 }
   0xc   : > { %p1764_p4 = por %p1754_p1, %p62_p0  ;;  %p1203_p5 = scmp.ge.s32.totalorder %s1684_s20, 1 }
   0xd   : > { %p1769_p6 = por %p174_p3, %p62_p0  ;;  %p181_p7 = scmp.lt.s32.totalorder %s1684_s20, 5 }
   0xe   : > { %s1686_s28 = smov [#allocation5]   ;;  %s40_s5 = sadd.s32 1, %s1680_s19 }
   0xf   : > { %s2056_s26 = scalar_select %p1769_p6, 1, 0 }
  0x10   : > { %p1774_p8 = pnand %p1203_p5, %p181_p7  ;;  %s197_s29 = sshll.u32 %s1686_s28, 4  ;;  %s198_s29 = int_to_ptr.vmem [resolvable:$true] %s197_s29 }
  0x11   : > { %s1557_s6 = scalar_lea.vmem %s198_s29, 2048  ;;  %p1565_p3 = scmp.lt.s32.totalorder %s198_s29, %s198_s29 }
  0x12   : > { %p1410_p9 = pneg %p1774_p8  ;;  %p1558_p12 = scmp.ne.s32.totalorder %s198_s29, %s1557_s6 }
  0x13   : > { %p1566_p5 = scmp.lt.s32.totalorder %s1557_s6, %s1557_s6 }
  0x14   : > { %p1782_p10 = pnand %p1410_p9, %p1754_p1 }
  0x15   : > { %p1567_p7 = por %p1566_p5, %p1565_p3 }
  0x16   : > { %p1548_p11 = pneg %p1782_p10 }
  0x18   : > { %p1560_p13 = pnand %p1558_p12, %p1548_p11 }
  0x1a   : > { %p1561_p0 = pneg %p1560_p13 }
  0x1c   : > { %p1568_p6 = pnand %p1567_p7, %p1561_p0 }
  0x1e   : > { %1571 = shalt.err (!%p1568_p6)
}
  0x1f   : > { %s1687_s7 = smov 64   ;;  %s1688_s8 = smov 4  }
  0x20   : > { %s2059_s1 = sld [smem:[#allocation11_spill]]  ;;  %p42_p9 = scmp.ge.s32.totalorder %s40_s5, 4 }
  0x21   : > { %s49_s11 = sadd.s32 1, %s1672_s17  ;;  %p56_p6 = scmp.ne.s32.totalorder %s1672_s17, %s1668_s16 }
  0x22   : > { %p57_p11 = scmp.eq.s32.totalorder %s1684_s20, 0  ;;  %s2071_s5 = smov (%p42_p9, %s40_s5), 0 }
  0x23   : > { %p1806_p13 = por %p1758_p2, %p56_p6  ;;  %s44_s14 = ssub.s32 %s1680_s19, %s2071_s5 }
  0x24   : > { %p1800_p12 = por %p57_p11, %p56_p6  ;;  %p1423_p0 = scmp.lt.s32.totalorder %s1684_s20, 4 }
  0x25   : > { %s2061_s13 = scalar_select %p1806_p13, 1, 0 }
  0x26   : > { %1413 = dma.hbm_to_vmem [thread:$0]  (!%p1782_p10), %s2059_s1, 2048, %s198_s29, [#allocation6], %s1687_s7, %s1687_s7, %s1688_s8  }
  0x27   : > { %p47_p10 = scmp.eq.s32.totalorder %s44_s14, 0  ;;  %s223_s21 = sand.u32 1, %s1672_s17  }
  0x28   : > { %s1208_s22 = sshll.u32 %s223_s21, 8  ;;  %s1272_s29 = sshll.u32 %s1680_s19, 12 }
  0x29   : > { %s1815_s28 = scalar_select %p47_p10, %s1672_s17, %s49_s11  }
  0x2a   : > { %s236_s7 = scalar_lea.hbm %s2046_s0, %s1272_s29  ;;  %s227_s8 = scalar_lea.vmem [#allocation2], %s1208_s22 }
  0x2b   : > { %s237_s9 = sshll.u32 %s227_s8, 4  ;;  %p1823_p2 = pnand %p1423_p0, %p1800_p12  ;;  %s238_s9 = int_to_ptr.vmem [resolvable:$true] %s237_s9 }
  0x2c   : > { %s224_s10 = scalar_lea.sflag [#allocation3], %s223_s21  ;;  %s1585_s14 = scalar_lea.vmem %s238_s9, 4096 }
  0x2d   : > { %p1574_p3 = pneg %p1823_p2  ;;  %p1586_p5 = scmp.ne.s32.totalorder %s238_s9, %s1585_s14 }
  0x2e   : > { %s1689_s11 = smov [#allocation2]  }
  0x2f   : > { %p1588_p7 = pnand %p1586_p5, %p1574_p3  ;;  %s1590_s1 = sshll.u32 %s1689_s11, 4  ;;  %s1591_s1 = int_to_ptr.vmem [resolvable:$false] %s1590_s1 }
  0x30   : > { %s1592_s29 = scalar_lea.vmem %s1591_s1, 8192  ;;  %p1593_p6 = scmp.lt.s32.totalorder %s238_s9, %s1591_s1 }
  0x31   : > { %p1589_p9 = pneg %p1588_p7  ;;  %p1594_p11 = scmp.lt.s32.totalorder %s1592_s29, %s1585_s14 }
  0x33   : > { %p1595_p10 = por %p1594_p11, %p1593_p6 }
  0x35   : > { %p1596_p13 = pnand %p1595_p10, %p1589_p9 }
  0x37   : > { %1599 = shalt.err (!%p1596_p13)
}
  0x38   : > { %s1690_s12 = smov 128   ;;  %s1691_s22 = smov 8  }
  0x39   : > { %1417 = dma.hbm_to_vmem [thread:$0]  (!%p1823_p2), %s236_s7, 4096, %s238_s9, %s224_s10, %s1690_s12, %s1690_s12, %s1691_s22  }
  0x3a   : > { %249 = sbr.rel (%p1774_p8) target bundleno = 374 (0x176), region = 36  ;;  %s1834_s21 = sand.u32 (!%p1774_p8), 1, %s1668_s16  }
  0x3b   : > { %s1213_s1 = sshll.u32 (!%p1774_p8), %s1834_s21, 8  ;;  %s252_s30 = scalar_lea.sflag (!%p1774_p8), [#allocation3], %s1834_s21 }
  0x3c   : > { %s1840_s6 = scalar_lea.vmem (!%p1774_p8), [#allocation2], %s1213_s1 }
  0x3f   : > { %1651 = dma.done.wait (%p1764_p4), %s252_s30, 4096  }
  0x40   : > { %1653 = vsyncadd (%p1764_p4), %s252_s30, 4294963200 }
  0x41   : > { %1655 = dma.done.wait (%p1754_p1), [#allocation6], 2048  }
  0x42   : > { %1657 = vsyncadd (%p1754_p1), [#allocation6], 4294965248  ;;  %v1482_v0 = vld [vmem:[#allocation5 + $0x78] sm:$0xff]   ;;  %v1484_v2 = vld [vmem:[#allocation5 + $0x70] sm:$0xff]   ;;  %s1898_s8 = scalar_lea.vmem [#allocation7], %s1213_s1  ;;  %s1273_s9 = sshll.u32 %s1676_s18, 12 }
  0x43   : > { %v1483_v1 = vld [vmem:[#allocation5 + $0x38] sm:$0xff]   ;;  %1274 = vmatprep.subr.bf16.mxu0 %v1482_v0  ;;  %1386 = vmatprep.subr.bf16.mxu1 %v1482_v0  ;;  %v1485_v3 = vld [vmem:[#allocation5 + $0x30] sm:$0xff]   ;;  %v1486_v4 = vld [vmem:[#allocation5 + $0x68] sm:$0xff]   ;;  %s1074_s24 = sshll.u32 %s1898_s8, 4  ;;  %s1993_s11 = scalar_lea.hbm %s2050_s4, %s1273_s9  ;;  %s1995_s24 = int_to_ptr.vmem [resolvable:$true] %s1074_s24 }
  0x44   : > { %1275 = vmatpush3.bf16.msra.mxu0 %v1483_v1  ;;  %1394 = vmatpush3.bf16.msra.mxu1 %v1483_v1  ;;  %v1487_v5 = vld [vmem:[#allocation5 + $0x28] sm:$0xff]   ;;  %v1488_v6 = vld [vmem:[#allocation5 + $0x60] sm:$0xff]   ;;  %v1490_v8 = vld [vmem:[#allocation5 + $0x58] sm:$0xff]   ;;  %s1060_s18 = scalar_lea.sflag [#allocation4], %s1834_s21  ;;  %s1600_s29 = scalar_lea.vmem %s1995_s24, 4096 }
  0x45   : > { %1276 = vmatprep.subr.bf16.mxu0 %v1484_v2  ;;  %1387 = vmatprep.subr.bf16.mxu1 %v1484_v2  ;;  %v1489_v7 = vld [vmem:[#allocation5 + $0x20] sm:$0xff]   ;;  %v1491_v9 = vld [vmem:[#allocation5 + $0x18] sm:$0xff]   ;;  %v1492_v10 = vld [vmem:[#allocation5 + $0x50] sm:$0xff]   ;;  %p1601_p1 = scmp.ne.s32.totalorder %s1995_s24, %s1600_s29  ;;  %p2063_p4 = scmp.ne.s32.totalorder %s2061_s13, 0 }
  0x46   : > { %v1500_v11 = vld [vmem:[%s1840_s6 + $0x4] ss:$8 sps:$4 sm:$0xff]   ;;  %v1493_v13 = vld [vmem:[#allocation5 + $0x10] sm:$0xff]   ;;  %v1498_v18 = vld [vmem:[%s1840_s6] ss:$8 sps:$4 sm:$0xff]   ;;  %s1692_s12 = smov [#allocation7]  }
  0x47   : > { %v1503_v12 = vld [vmem:[%s1840_s6 + $0x84] ss:$8 sps:$4 sm:$0xff]   ;;  %721 = vmatprep.mubr.bf16.mxu0 %v1500_v11  ;;  %v1501_v19 = vld [vmem:[%s1840_s6 + $0x80] ss:$8 sps:$4 sm:$0xff]   ;;  %v1504_v20 = vld [vmem:[%s1840_s6 + $0x14] ss:$8 sps:$4 sm:$0xff]   ;;  %p1602_p8 = pnand %p1601_p1, %p2063_p4 }
  0x48   : > { %1277 = vmatpush3.bf16.msra.mxu0 %v1485_v3  ;;  %1395 = vmatpush3.bf16.msra.mxu1 %v1485_v3  ;;  %v1494_v14 = vld [vmem:[#allocation5 + $0x48] sm:$0xff]   ;;  %v1496_v16 = vld [vmem:[#allocation5 + $0x40] sm:$0xff]   ;;  %v1506_v21 = vld [vmem:[%s1840_s6 + $0x94] ss:$8 sps:$4 sm:$0xff]   ;;  %s1604_s22 = sshll.u32 %s1692_s12, 4  ;;  %s1605_s22 = int_to_ptr.vmem [resolvable:$false] %s1604_s22 }
  0x49   : > { %1278 = vmatprep.subr.bf16.mxu0 %v1486_v4  ;;  %1388 = vmatprep.subr.bf16.mxu1 %v1486_v4  ;;  %v1495_v15 = vld [vmem:[#allocation5 + $0x8] sm:$0xff]   ;;  %v1497_v17 = vld [vmem:[#allocation5] sm:$0xff]   ;;  %v1508_v22 = vld [vmem:[%s1840_s6 + $0x10] ss:$8 sps:$4 sm:$0xff]   ;;  %p1603_p12 = pneg %p1602_p8  ;;  %s1606_s1 = scalar_lea.vmem %s1605_s22, 8192 }
  0x4a   : > { %785 = vmatprep.mubr.bf16.mxu1 %v1503_v12  ;;  %v1509_v23 = vld [vmem:[%s1840_s6 + $0x90] ss:$8 sps:$4 sm:$0xff]   ;;  %v1510_v24 = vld [vmem:[%s1840_s6 + $0x24] ss:$8 sps:$4 sm:$0xff]   ;;  %v1514_v26 = vld [vmem:[%s1840_s6 + $0x20] ss:$8 sps:$4 sm:$0xff]   ;;  %p1607_p13 = scmp.lt.s32.totalorder %s1995_s24, %s1605_s22  ;;  %p1608_p0 = scmp.lt.s32.totalorder %s1606_s1, %s1600_s29 }
  0x4b   : > { %v1512_v25 = vld [vmem:[%s1840_s6 + $0xa4] ss:$8 sps:$4 sm:$0xff]   ;;  %v1515_v27 = vld [vmem:[%s1840_s6 + $0xa0] ss:$8 sps:$4 sm:$0xff]   ;;  %v1516_v28 = vld [vmem:[%s1840_s6 + $0x34] ss:$8 sps:$4 sm:$0xff]  }
  0x4c   : > { %1279 = vmatpush3.bf16.msra.mxu0 %v1487_v5  ;;  %1396 = vmatpush3.bf16.msra.mxu1 %v1487_v5  ;;  %v1518_v29 = vld [vmem:[%s1840_s6 + $0xb4] ss:$8 sps:$4 sm:$0xff]   ;;  %v1520_v30 = vld [vmem:[%s1840_s6 + $0x30] ss:$8 sps:$4 sm:$0xff]   ;;  %v1522_v32 = vld [vmem:[%s1840_s6 + $0x44] ss:$8 sps:$4 sm:$0xff]   ;;  %p1609_p2 = por %p1608_p0, %p1607_p13 }
  0x4d   : > { %1280 = vmatprep.subr.bf16.mxu0 %v1488_v6  ;;  %1389 = vmatprep.subr.bf16.mxu1 %v1488_v6  ;;  %v1521_v31 = vld [vmem:[%s1840_s6 + $0xb0] ss:$8 sps:$4 sm:$0xff]   ;;  %v1524_v33 = vld [vmem:[%s1840_s6 + $0xc4] ss:$8 sps:$4 sm:$0xff]   ;;  %v1526_v34 = vld [vmem:[%s1840_s6 + $0x40] ss:$8 sps:$4 sm:$0xff]  }
  0x4e   : > { %v1527_v35 = vld [vmem:[%s1840_s6 + $0xc0] ss:$8 sps:$4 sm:$0xff]   ;;  %v1528_v36 = vld [vmem:[%s1840_s6 + $0x54] ss:$8 sps:$4 sm:$0xff]   ;;  %v1532_v38 = vld [vmem:[%s1840_s6 + $0x50] ss:$8 sps:$4 sm:$0xff]   ;;  %p1610_p3 = pnand %p1609_p2, %p1603_p12 }
  0x4f   : > { %v1530_v37 = vld [vmem:[%s1840_s6 + $0xd4] ss:$8 sps:$4 sm:$0xff]   ;;  %v1533_v39 = vld [vmem:[%s1840_s6 + $0xd0] ss:$8 sps:$4 sm:$0xff]   ;;  %v1534_v40 = vld [vmem:[%s1840_s6 + $0x64] ss:$8 sps:$4 sm:$0xff]  }
  0x50   : > { %1281 = vmatpush3.bf16.msra.mxu0 %v1489_v7  ;;  %1397 = vmatpush3.bf16.msra.mxu1 %v1489_v7  ;;  %v1536_v41 = vld [vmem:[%s1840_s6 + $0xe4] ss:$8 sps:$4 sm:$0xff]   ;;  %v1538_v42 = vld [vmem:[%s1840_s6 + $0x60] ss:$8 sps:$4 sm:$0xff]   ;;  %v1540_v44 = vld [vmem:[%s1840_s6 + $0x74] ss:$8 sps:$4 sm:$0xff]  }
  0x51   : > { %1282 = vmatprep.subr.bf16.mxu0 %v1490_v8  ;;  %1390 = vmatprep.subr.bf16.mxu1 %v1490_v8  ;;  %v1539_v43 = vld [vmem:[%s1840_s6 + $0xe0] ss:$8 sps:$4 sm:$0xff]   ;;  %v1542_v45 = vld [vmem:[%s1840_s6 + $0xf4] ss:$8 sps:$4 sm:$0xff]   ;;  %v1544_v46 = vld [vmem:[%s1840_s6 + $0x70] ss:$8 sps:$4 sm:$0xff]  }
  0x52   : > { %v1545_v47 = vld [vmem:[%s1840_s6 + $0xf0] ss:$8 sps:$4 sm:$0xff]   ;;  %v1885_v54 = vld [vmem:[%s2048_s2] ss:$0 sm:$0xff] }
  0x53   : > { %v1890_v57 = vld [vmem:[%s2049_s3] ss:$0 sm:$0xff] }
  0x54   : > { %1283 = vmatpush3.bf16.msra.mxu0 %v1491_v9  ;;  %1398 = vmatpush3.bf16.msra.mxu1 %v1491_v9 }
  0x55   : > { %1284 = vmatprep.subr.bf16.mxu0 %v1492_v10  ;;  %1391 = vmatprep.subr.bf16.mxu1 %v1492_v10 }
  0x58   : > { %1285 = vmatpush3.bf16.msra.mxu0 %v1493_v13  ;;  %1399 = vmatpush3.bf16.msra.mxu1 %v1493_v13 }
  0x59   : > { %1286 = vmatprep.subr.bf16.mxu0 %v1494_v14  ;;  %1392 = vmatprep.subr.bf16.mxu1 %v1494_v14 }
  0x5c   : > { %1287 = vmatpush3.bf16.msra.mxu0 %v1495_v15  ;;  %1400 = vmatpush3.bf16.msra.mxu1 %v1495_v15 }
  0x5d   : > { %1288 = vmatprep.subr.bf16.mxu0 %v1496_v16  ;;  %1393 = vmatprep.subr.bf16.mxu1 %v1496_v16 }
  0x60   : > { %1289 = vmatpush3.bf16.msra.mxu0 %v1497_v17  ;;  %1401 = vmatpush3.bf16.msra.mxu1 %v1497_v17 }
  0x63   : > { %722 = vmatmul.mubr.bf16.vlgmr.msra.gmra.mxu0 %v1498_v18  ;;  %786 = vmatmul.mubr.bf16.vlgmr.msra.gmra.mxu1 %v1501_v19 }
  0x64   : > { %729 = vmatprep.mubr.bf16.mxu0 %v1504_v20  ;;  %793 = vmatprep.mubr.bf16.mxu1 %v1506_v21 }
  0x6b   : > { %730 = vmatmul.mubr.bf16.gmra.mxu0 %v1508_v22  ;;  %794 = vmatmul.mubr.bf16.gmra.mxu1 %v1509_v23 }
  0x6c   : > { %737 = vmatprep.mubr.bf16.mxu0 %v1510_v24  ;;  %801 = vmatprep.mubr.bf16.mxu1 %v1512_v25 }
  0x73   : > { %738 = vmatmul.mubr.bf16.gmra.mxu0 %v1514_v26  ;;  %802 = vmatmul.mubr.bf16.gmra.mxu1 %v1515_v27 }
  0x74   : > { %745 = vmatprep.mubr.bf16.mxu0 %v1516_v28  ;;  %809 = vmatprep.mubr.bf16.mxu1 %v1518_v29 }
  0x7b   : > { %746 = vmatmul.mubr.bf16.gmra.mxu0 %v1520_v30  ;;  %810 = vmatmul.mubr.bf16.gmra.mxu1 %v1521_v31 }
  0x7c   : > { %753 = vmatprep.mubr.bf16.mxu0 %v1522_v32  ;;  %817 = vmatprep.mubr.bf16.mxu1 %v1524_v33 }
  0x83   : > { %754 = vmatmul.mubr.bf16.gmra.mxu0 %v1526_v34  ;;  %818 = vmatmul.mubr.bf16.gmra.mxu1 %v1527_v35 }
  0x84   : > { %761 = vmatprep.mubr.bf16.mxu0 %v1528_v36  ;;  %825 = vmatprep.mubr.bf16.mxu1 %v1530_v37 }
  0x8b   : > { %762 = vmatmul.mubr.bf16.gmra.mxu0 %v1532_v38  ;;  %826 = vmatmul.mubr.bf16.gmra.mxu1 %v1533_v39 }
  0x8c   : > { %769 = vmatprep.mubr.bf16.mxu0 %v1534_v40  ;;  %833 = vmatprep.mubr.bf16.mxu1 %v1536_v41 }
  0x93   : > { %770 = vmatmul.mubr.bf16.gmra.mxu0 %v1538_v42  ;;  %834 = vmatmul.mubr.bf16.gmra.mxu1 %v1539_v43 }
  0x94   : > { %777 = vmatprep.mubr.bf16.mxu0 %v1540_v44  ;;  %841 = vmatprep.mubr.bf16.mxu1 %v1542_v45 }
  0x9b   : > { %778 = vmatmul.mubr.bf16.gmra.mxu0 %v1544_v46  ;;  %842 = vmatmul.mubr.bf16.gmra.mxu1 %v1545_v47 }
 0x123   : > { %v1290_v48 = vpop.f32.mrf.mxu0  ;;  %v1338_v49 = vpop.f32.mrf.mxu1 }
 0x125   : > { %v1291_v50 = vpop.f32.mrf.mxu0  ;;  %v1339_v51 = vpop.f32.mrf.mxu1 }
 0x126   : > { %v1292_v52 = vadd.f32 %v1291_v50, %v1290_v48  ;;  %v1340_v53 = vadd.f32 %v1339_v51, %v1338_v49 }
 0x127   : > { %v1293_v55 = vpop.f32.mrf.mxu0  ;;  %v1341_v56 = vpop.f32.mrf.mxu1 }
 0x128   : > { %v956_v60 = vmul.f32 %v1292_v52, %v1885_v54  ;;  %v972_v61 = vmul.f32 %v1340_v53, %v1885_v54 }
 0x129   : > { %v1294_v58 = vpop.f32.mrf.mxu0  ;;  %v1342_v59 = vpop.f32.mrf.mxu1 }
 0x12a   : > { %v1295_v62 = vadd.f32 %v1294_v58, %v1293_v55  ;;  %v1343_v63 = vadd.f32 %v1342_v59, %v1341_v56  ;;  %v995_v2 = vadd.f32 %v1890_v57, %v956_v60  ;;  %v1011_v3 = vadd.f32 %v1890_v57, %v972_v61 }
 0x12b   : > { %v1296_v0 = vpop.f32.mrf.mxu0  ;;  %v1344_v1 = vpop.f32.mrf.mxu1 }
 0x12c   : > { %1027 = vst [vmem:[%s1898_s8] sm:$0xff] %v995_v2  ;;  %1043 = vst [vmem:[%s1898_s8 + $0x80] sm:$0xff] %v1011_v3  ;;  %v957_v6 = vmul.f32 %v1295_v62, %v1885_v54  ;;  %v973_v7 = vmul.f32 %v1343_v63, %v1885_v54 }
 0x12d   : > { %v1297_v4 = vpop.f32.mrf.mxu0  ;;  %v1345_v5 = vpop.f32.mrf.mxu1 }
 0x12e   : > { %v1298_v8 = vadd.f32 %v1297_v4, %v1296_v0  ;;  %v1346_v9 = vadd.f32 %v1345_v5, %v1344_v1  ;;  %v996_v12 = vadd.f32 %v1890_v57, %v957_v6  ;;  %v1012_v13 = vadd.f32 %v1890_v57, %v973_v7 }
 0x12f   : > { %v1299_v10 = vpop.f32.mrf.mxu0  ;;  %v1347_v11 = vpop.f32.mrf.mxu1 }
 0x130   : > { %1028 = vst [vmem:[%s1898_s8 + $0x8] sm:$0xff] %v996_v12  ;;  %1044 = vst [vmem:[%s1898_s8 + $0x88] sm:$0xff] %v1012_v13  ;;  %v958_v16 = vmul.f32 %v1298_v8, %v1885_v54  ;;  %v974_v17 = vmul.f32 %v1346_v9, %v1885_v54 }
 0x131   : > { %v1300_v14 = vpop.f32.mrf.mxu0  ;;  %v1348_v15 = vpop.f32.mrf.mxu1 }
 0x132   : > { %v1301_v18 = vadd.f32 %v1300_v14, %v1299_v10  ;;  %v1349_v19 = vadd.f32 %v1348_v15, %v1347_v11  ;;  %v997_v22 = vadd.f32 %v1890_v57, %v958_v16  ;;  %v1013_v23 = vadd.f32 %v1890_v57, %v974_v17 }
 0x133   : > { %v1302_v20 = vpop.f32.mrf.mxu0  ;;  %v1350_v21 = vpop.f32.mrf.mxu1 }
 0x134   : > { %1029 = vst [vmem:[%s1898_s8 + $0x10] sm:$0xff] %v997_v22  ;;  %1045 = vst [vmem:[%s1898_s8 + $0x90] sm:$0xff] %v1013_v23  ;;  %v959_v26 = vmul.f32 %v1301_v18, %v1885_v54  ;;  %v975_v27 = vmul.f32 %v1349_v19, %v1885_v54 }
 0x135   : > { %v1303_v24 = vpop.f32.mrf.mxu0  ;;  %v1351_v25 = vpop.f32.mrf.mxu1 }
 0x136   : > { %v1304_v28 = vadd.f32 %v1303_v24, %v1302_v20  ;;  %v1352_v29 = vadd.f32 %v1351_v25, %v1350_v21  ;;  %v998_v32 = vadd.f32 %v1890_v57, %v959_v26  ;;  %v1014_v33 = vadd.f32 %v1890_v57, %v975_v27 }
 0x137   : > { %v1305_v30 = vpop.f32.mrf.mxu0  ;;  %v1353_v31 = vpop.f32.mrf.mxu1 }
 0x138   : > { %1030 = vst [vmem:[%s1898_s8 + $0x18] sm:$0xff] %v998_v32  ;;  %1046 = vst [vmem:[%s1898_s8 + $0x98] sm:$0xff] %v1014_v33  ;;  %v960_v36 = vmul.f32 %v1304_v28, %v1885_v54  ;;  %v976_v37 = vmul.f32 %v1352_v29, %v1885_v54 }
 0x139   : > { %v1306_v34 = vpop.f32.mrf.mxu0  ;;  %v1354_v35 = vpop.f32.mrf.mxu1 }
 0x13a   : > { %v1307_v38 = vadd.f32 %v1306_v34, %v1305_v30  ;;  %v1355_v39 = vadd.f32 %v1354_v35, %v1353_v31  ;;  %v999_v42 = vadd.f32 %v1890_v57, %v960_v36  ;;  %v1015_v43 = vadd.f32 %v1890_v57, %v976_v37 }
 0x13b   : > { %v1308_v40 = vpop.f32.mrf.mxu0  ;;  %v1356_v41 = vpop.f32.mrf.mxu1 }
 0x13c   : > { %1031 = vst [vmem:[%s1898_s8 + $0x20] sm:$0xff] %v999_v42  ;;  %1047 = vst [vmem:[%s1898_s8 + $0xa0] sm:$0xff] %v1015_v43  ;;  %v961_v46 = vmul.f32 %v1307_v38, %v1885_v54  ;;  %v977_v47 = vmul.f32 %v1355_v39, %v1885_v54 }
 0x13d   : > { %v1309_v44 = vpop.f32.mrf.mxu0  ;;  %v1357_v45 = vpop.f32.mrf.mxu1 }
 0x13e   : > { %v1310_v48 = vadd.f32 %v1309_v44, %v1308_v40  ;;  %v1358_v49 = vadd.f32 %v1357_v45, %v1356_v41  ;;  %v1000_v52 = vadd.f32 %v1890_v57, %v961_v46  ;;  %v1016_v53 = vadd.f32 %v1890_v57, %v977_v47 }
 0x13f   : > { %v1311_v50 = vpop.f32.mrf.mxu0  ;;  %v1359_v51 = vpop.f32.mrf.mxu1 }
 0x140   : > { %1032 = vst [vmem:[%s1898_s8 + $0x28] sm:$0xff] %v1000_v52  ;;  %1048 = vst [vmem:[%s1898_s8 + $0xa8] sm:$0xff] %v1016_v53  ;;  %v962_v58 = vmul.f32 %v1310_v48, %v1885_v54  ;;  %v978_v59 = vmul.f32 %v1358_v49, %v1885_v54 }
 0x141   : > { %v1312_v55 = vpop.f32.mrf.mxu0  ;;  %v1360_v56 = vpop.f32.mrf.mxu1 }
 0x142   : > { %v1313_v60 = vadd.f32 %v1312_v55, %v1311_v50  ;;  %v1361_v61 = vadd.f32 %v1360_v56, %v1359_v51  ;;  %v1001_v0 = vadd.f32 %v1890_v57, %v962_v58  ;;  %v1017_v1 = vadd.f32 %v1890_v57, %v978_v59 }
 0x143   : > { %v1314_v62 = vpop.f32.mrf.mxu0  ;;  %v1362_v63 = vpop.f32.mrf.mxu1 }
 0x144   : > { %1033 = vst [vmem:[%s1898_s8 + $0x30] sm:$0xff] %v1001_v0  ;;  %1049 = vst [vmem:[%s1898_s8 + $0xb0] sm:$0xff] %v1017_v1  ;;  %v963_v4 = vmul.f32 %v1313_v60, %v1885_v54  ;;  %v979_v5 = vmul.f32 %v1361_v61, %v1885_v54 }
 0x145   : > { %v1315_v2 = vpop.f32.mrf.mxu0  ;;  %v1363_v3 = vpop.f32.mrf.mxu1 }
 0x146   : > { %v1316_v6 = vadd.f32 %v1315_v2, %v1314_v62  ;;  %v1364_v7 = vadd.f32 %v1363_v3, %v1362_v63  ;;  %v1002_v10 = vadd.f32 %v1890_v57, %v963_v4  ;;  %v1018_v11 = vadd.f32 %v1890_v57, %v979_v5 }
 0x147   : > { %v1317_v8 = vpop.f32.mrf.mxu0  ;;  %v1365_v9 = vpop.f32.mrf.mxu1 }
 0x148   : > { %1034 = vst [vmem:[%s1898_s8 + $0x38] sm:$0xff] %v1002_v10  ;;  %1050 = vst [vmem:[%s1898_s8 + $0xb8] sm:$0xff] %v1018_v11  ;;  %v964_v14 = vmul.f32 %v1316_v6, %v1885_v54  ;;  %v980_v15 = vmul.f32 %v1364_v7, %v1885_v54 }
 0x149   : > { %v1318_v12 = vpop.f32.mrf.mxu0  ;;  %v1366_v13 = vpop.f32.mrf.mxu1 }
 0x14a   : > { %v1319_v16 = vadd.f32 %v1318_v12, %v1317_v8  ;;  %v1367_v17 = vadd.f32 %v1366_v13, %v1365_v9  ;;  %v1003_v20 = vadd.f32 %v1890_v57, %v964_v14  ;;  %v1019_v21 = vadd.f32 %v1890_v57, %v980_v15 }
 0x14b   : > { %v1320_v18 = vpop.f32.mrf.mxu0  ;;  %v1368_v19 = vpop.f32.mrf.mxu1 }
 0x14c   : > { %1035 = vst [vmem:[%s1898_s8 + $0x40] sm:$0xff] %v1003_v20  ;;  %1051 = vst [vmem:[%s1898_s8 + $0xc0] sm:$0xff] %v1019_v21  ;;  %v965_v24 = vmul.f32 %v1319_v16, %v1885_v54  ;;  %v981_v25 = vmul.f32 %v1367_v17, %v1885_v54 }
 0x14d   : > { %v1321_v22 = vpop.f32.mrf.mxu0  ;;  %v1369_v23 = vpop.f32.mrf.mxu1 }
 0x14e   : > { %v1322_v26 = vadd.f32 %v1321_v22, %v1320_v18  ;;  %v1370_v27 = vadd.f32 %v1369_v23, %v1368_v19  ;;  %v1004_v30 = vadd.f32 %v1890_v57, %v965_v24  ;;  %v1020_v31 = vadd.f32 %v1890_v57, %v981_v25 }
 0x14f   : > { %v1323_v28 = vpop.f32.mrf.mxu0  ;;  %v1371_v29 = vpop.f32.mrf.mxu1 }
 0x150   : > { %1036 = vst [vmem:[%s1898_s8 + $0x48] sm:$0xff] %v1004_v30  ;;  %1052 = vst [vmem:[%s1898_s8 + $0xc8] sm:$0xff] %v1020_v31  ;;  %v966_v34 = vmul.f32 %v1322_v26, %v1885_v54  ;;  %v982_v35 = vmul.f32 %v1370_v27, %v1885_v54 }
 0x151   : > { %v1324_v32 = vpop.f32.mrf.mxu0  ;;  %v1372_v33 = vpop.f32.mrf.mxu1 }
 0x152   : > { %v1325_v36 = vadd.f32 %v1324_v32, %v1323_v28  ;;  %v1373_v37 = vadd.f32 %v1372_v33, %v1371_v29  ;;  %v1005_v40 = vadd.f32 %v1890_v57, %v966_v34  ;;  %v1021_v41 = vadd.f32 %v1890_v57, %v982_v35 }
 0x153   : > { %v1326_v38 = vpop.f32.mrf.mxu0  ;;  %v1374_v39 = vpop.f32.mrf.mxu1 }
 0x154   : > { %1037 = vst [vmem:[%s1898_s8 + $0x50] sm:$0xff] %v1005_v40  ;;  %1053 = vst [vmem:[%s1898_s8 + $0xd0] sm:$0xff] %v1021_v41  ;;  %v967_v44 = vmul.f32 %v1325_v36, %v1885_v54  ;;  %v983_v45 = vmul.f32 %v1373_v37, %v1885_v54 }
 0x155   : > { %v1327_v42 = vpop.f32.mrf.mxu0  ;;  %v1375_v43 = vpop.f32.mrf.mxu1 }
 0x156   : > { %v1328_v46 = vadd.f32 %v1327_v42, %v1326_v38  ;;  %v1376_v47 = vadd.f32 %v1375_v43, %v1374_v39  ;;  %v1006_v50 = vadd.f32 %v1890_v57, %v967_v44  ;;  %v1022_v51 = vadd.f32 %v1890_v57, %v983_v45 }
 0x157   : > { %v1329_v48 = vpop.f32.mrf.mxu0  ;;  %v1377_v49 = vpop.f32.mrf.mxu1 }
 0x158   : > { %1038 = vst [vmem:[%s1898_s8 + $0x58] sm:$0xff] %v1006_v50  ;;  %1054 = vst [vmem:[%s1898_s8 + $0xd8] sm:$0xff] %v1022_v51  ;;  %v968_v55 = vmul.f32 %v1328_v46, %v1885_v54  ;;  %v984_v56 = vmul.f32 %v1376_v47, %v1885_v54 }
 0x159   : > { %v1330_v52 = vpop.f32.mrf.mxu0  ;;  %v1378_v53 = vpop.f32.mrf.mxu1 }
 0x15a   : > { %v1331_v58 = vadd.f32 %v1330_v52, %v1329_v48  ;;  %v1379_v59 = vadd.f32 %v1378_v53, %v1377_v49  ;;  %v1007_v62 = vadd.f32 %v1890_v57, %v968_v55  ;;  %v1023_v63 = vadd.f32 %v1890_v57, %v984_v56 }
 0x15b   : > { %v1332_v60 = vpop.f32.mrf.mxu0  ;;  %v1380_v61 = vpop.f32.mrf.mxu1 }
 0x15c   : > { %1039 = vst [vmem:[%s1898_s8 + $0x60] sm:$0xff] %v1007_v62  ;;  %1055 = vst [vmem:[%s1898_s8 + $0xe0] sm:$0xff] %v1023_v63  ;;  %v969_v2 = vmul.f32 %v1331_v58, %v1885_v54  ;;  %v985_v3 = vmul.f32 %v1379_v59, %v1885_v54 }
 0x15d   : > { %v1333_v0 = vpop.f32.mrf.mxu0  ;;  %v1381_v1 = vpop.f32.mrf.mxu1 }
 0x15e   : > { %v1334_v4 = vadd.f32 %v1333_v0, %v1332_v60  ;;  %v1382_v5 = vadd.f32 %v1381_v1, %v1380_v61  ;;  %v1008_v8 = vadd.f32 %v1890_v57, %v969_v2  ;;  %v1024_v9 = vadd.f32 %v1890_v57, %v985_v3 }
 0x15f   : > { %v1335_v6 = vpop.f32.mrf.mxu0  ;;  %v1383_v7 = vpop.f32.mrf.mxu1 }
 0x160   : > { %1040 = vst [vmem:[%s1898_s8 + $0x68] sm:$0xff] %v1008_v8  ;;  %1056 = vst [vmem:[%s1898_s8 + $0xe8] sm:$0xff] %v1024_v9  ;;  %v970_v12 = vmul.f32 %v1334_v4, %v1885_v54  ;;  %v986_v13 = vmul.f32 %v1382_v5, %v1885_v54 }
 0x161   : > { %v1336_v10 = vpop.f32.mrf.mxu0  ;;  %v1384_v11 = vpop.f32.mrf.mxu1 }
 0x162   : > { %v1337_v14 = vadd.f32 %v1336_v10, %v1335_v6  ;;  %v1385_v15 = vadd.f32 %v1384_v11, %v1383_v7  ;;  %v1009_v16 = vadd.f32 %v1890_v57, %v970_v12  ;;  %v1025_v17 = vadd.f32 %v1890_v57, %v986_v13 }
 0x164   : > { %1041 = vst [vmem:[%s1898_s8 + $0x70] sm:$0xff] %v1009_v16  ;;  %1057 = vst [vmem:[%s1898_s8 + $0xf0] sm:$0xff] %v1025_v17  ;;  %v971_v18 = vmul.f32 %v1337_v14, %v1885_v54  ;;  %v987_v19 = vmul.f32 %v1385_v15, %v1885_v54 }
 0x166   : > { %v1010_v20 = vadd.f32 %v1890_v57, %v971_v18  ;;  %v1026_v21 = vadd.f32 %v1890_v57, %v987_v19 }
 0x168   : > { %1042 = vst [vmem:[%s1898_s8 + $0x78] sm:$0xff] %v1010_v20  ;;  %1058 = vst [vmem:[%s1898_s8 + $0xf8] sm:$0xff] %v1026_v21 }
 0x169   : > { %1613 = shalt.err (!%p1610_p3)
}
 0x16a   : > { %s1614_s30 = scalar_lea.hbm %s1993_s11, 4096  ;;  %s1618_s25 = scalar_lea.hbm %s2050_s4, 16384 }
 0x16b   : > { %p1615_p5 = scmp.ne.s32.totalorder %s1993_s11, %s1614_s30  ;;  %p1619_p6 = scmp.lt.s32.totalorder %s1993_s11, %s2050_s4 }
 0x16c   : > { %p1620_p11 = scmp.lt.s32.totalorder %s1618_s25, %s1614_s30 }
 0x16d   : > { %p1616_p7 = pnand %p1615_p5, %p2063_p4 }
 0x16e   : > { %p1621_p10 = por %p1620_p11, %p1619_p6 }
 0x16f   : > { %p1617_p9 = pneg %p1616_p7 }
 0x171   : > { %p1622_p1 = pnand %p1621_p10, %p1617_p9 }
 0x173   : > { %1625 = shalt.err (!%p1622_p1)
}
 0x174   : > { %s1693_s8 = smov 128   ;;  %s1694_s9 = smov 8  }
 0x175   : > { %1408 = dma.vmem_to_hbm [thread:$0]  (%p2063_p4), %s1995_s24, 4096, %s1993_s11, %s1060_s18, %s1693_s8, %s1693_s8, %s1694_s9  }
 0x176 PF: > { %p1425_p8 = scmp.ge.s32.totalorder %s1684_s20, 2  ;;  %s1089_s10 = sand.u32 1, %s1664_s15  }
 0x177   : > { %p2064_p12 = scmp.ne.s32.totalorder %s2056_s26, 0  ;;  %s1090_s14 = scalar_lea.sflag [#allocation4], %s1089_s10 }
 0x179   : > { %p1419_p13 = pnand %p1425_p8, %p2064_p12 }
 0x17b   : > { %p1420_p0 = pneg %p1419_p13 }
 0x17d   : > { %1659 = dma.done.wait (%p1420_p0), %s1090_s14, 4096  }
 0x17e   : > { %1661 = vsyncadd (%p1420_p0), %s1090_s14, 4294963200  ;;  %s21_s20 = sadd.s32 1, %s1684_s20   ;;  %s2065_s15 = smov %s1668_s16 }
 0x17f   : > { %p18_p2 = scmp.ge.s32.totalorder %s21_s20, 6   ;;  %s2066_s16 = smov %s1672_s17 }
 0x180   : > { %s2067_s17 = smov %s1815_s28  ;;  %s2068_s18 = smov %s1680_s19 }
 0x181   : > { %s2069_s19 = smov %s2071_s5  ;;  %20 = sbr.rel (!%p18_p2) target bundleno = 9 (0x9), region = 100 }
 0x186   :  { %1095 = vsyncpa [#allocation3], 1 }
 0x187   :  { %1097 = vsyncpa [#allocation3 + $0x1], 1 }
 0x188   :  { %1098 = vsyncpa [#allocation6], 1 }
 0x189   :  { %1099 = vsyncpa [#allocation4], 1 }
 0x18a   :  { %1101 = vsyncpa [#allocation4 + $0x1], 1 }

</bundles_post_ra>
